<compile_context>
chip_gen: v6e
topology: v6e:2x2x1
jax: 0.10.0
libtpu: 0.0.40
codegen_flags: <defaults>
</compile_context>

<pallas_src>
from typing import NamedTuple

import jax
import jax.numpy as jnp
from jax import lax
from jax.experimental import pallas as pl
from jax.experimental.pallas import tpu as pltpu


def _round_up(x, m):
    return ((x + m - 1) // m) * m


class FCLParams(NamedTuple):
    w1: jax.Array        # [F_pad, F_pad] bf16
    b1: jax.Array        # [1, F_pad] f32
    w2: jax.Array        # [F_pad, F_pad] bf16
    b2: jax.Array        # [1, F_pad] f32
    features: int        # original F


def _fcl_kernel(x_ref, w1_ref, b1_ref, w2_ref, b2_ref, o_ref):
    # x is already bf16 (cast in the wrapper); MXU matmul with f32 accumulation.
    h = jnp.dot(x_ref[...], w1_ref[...], preferred_element_type=jnp.float32)
    # Bias add + tanh in f32 (VPU/EUP).
    h = jnp.tanh(h + b1_ref[...])
    # Second matmul: hidden cast back to bf16 for the MXU, f32 accumulation.
    out = jnp.dot(h.astype(jnp.bfloat16), w2_ref[...],
                  preferred_element_type=jnp.float32)
    o_ref[...] = (out + b2_ref[...]).astype(o_ref.dtype)


def _vmem_cap_bytes():
    """~85% of physical VMEM (generation-aware); conservative fallback = 64 MiB part."""
    try:
        cap = int(pltpu.get_tpu_info().vmem_capacity_bytes)
    except Exception:
        cap = 64 * 1024 * 1024
    return int(cap * 0.85)


def _vmem_needed(tb, F_pad, out_itemsize):
    return (
        2 * tb * F_pad * 2               # bf16 x tile, double-buffered
        + 2 * tb * F_pad * out_itemsize  # output tile, double-buffered
        + 2 * F_pad * F_pad * 2          # two bf16 weights (single-buffered)
        + 2 * F_pad * 4                  # biases (f32)
        + tb * F_pad * 4                 # f32 hidden activation
        + tb * F_pad * 2                 # bf16 copy of hidden for 2nd matmul
    )


def _choose_tb(B, F_pad, block_b, vmem_cap, out_itemsize):
    B8 = _round_up(B, 8)
    if block_b is not None:
        return max(8, min(_round_up(block_b, 8), B8))
    # Aim for >= ~2 MiB of streamed bf16 input per grid step, multiples of 256.
    target = _round_up(max(256, (2 * 1024 * 1024) // (F_pad * 2)), 256)
    # Keep at least 2 grid steps when the batch allows it (megacore on v7x).
    if B8 > 256:
        target = min(target, _round_up(pl.cdiv(B8, 2), 256))
    tb = min(target, B8)
    # Shrink until the per-step working set fits under the VMEM cap.
    while tb > 8 and _vmem_needed(tb, F_pad, out_itemsize) > vmem_cap:
        tb = max(8, _round_up(tb // 2, 8))
    return max(8, tb)


def _make_specs(tb, F_pad, single_buffer_consts):
    if single_buffer_consts:
        def const(shape):
            # Constant index_map -> DMA'd once; single buffer saves VMEM.
            return pl.BlockSpec(shape, lambda i: (0, 0),
                                pipeline_mode=pl.Buffered(1))
    else:
        def const(shape):
            return pl.BlockSpec(shape, lambda i: (0, 0))

    in_specs = [
        pl.BlockSpec((tb, F_pad), lambda i: (i, 0)),   # x tile (streamed)
        const((F_pad, F_pad)),                         # w1 (resident)
        const((1, F_pad)),                             # b1
        const((F_pad, F_pad)),                         # w2 (resident)
        const((1, F_pad)),                             # b2
    ]
    out_spec = pl.BlockSpec((tb, F_pad), lambda i: (i, 0))
    return in_specs, out_spec


def prepare_fcl_params(w1, b1, w2, b2):
    """Pad to lane-dense F_pad and cast to MXU/VPU dtypes ONCE (out of hot path).

    w1, w2: [in, out] (pre-transposed vs. PyTorch's [out, in]); b1, b2: [F].
    """
    F = w1.shape[0]
    F_pad = _round_up(F, 128)
    w1_p = jnp.zeros((F_pad, F_pad), jnp.bfloat16).at[:F, :F].set(
        w1.astype(jnp.bfloat16))
    w2_p = jnp.zeros((F_pad, F_pad), jnp.bfloat16).at[:F, :F].set(
        w2.astype(jnp.bfloat16))
    b1_p = jnp.zeros((1, F_pad), jnp.float32).at[0, :F].set(b1.astype(jnp.float32))
    b2_p = jnp.zeros((1, F_pad), jnp.float32).at[0, :F].set(b2.astype(jnp.float32))
    return FCLParams(w1_p, b1_p, w2_p, b2_p, F)


def fcl_forward(emb_in, params: FCLParams, *, block_b=None, out_dtype=None):
    """FCL forward: tanh(emb_in @ w1 + b1) @ w2 + b2.

    emb_in: [B, F]; params: prepared (padded, bf16) weights from prepare_fcl_params.
    """
    B, F = emb_in.shape
    assert F == params.features, (F, params.features)
    F_pad = params.w1.shape[0]
    out_dtype = jnp.dtype(emb_in.dtype if out_dtype is None else out_dtype)
    out_itemsize = out_dtype.itemsize

    vmem_cap = _vmem_cap_bytes()
    tb = _choose_tb(B, F_pad, block_b, vmem_cap, out_itemsize)
    B_pad = _round_up(B, tb)
    n_tiles = B_pad // tb

    # Cast + pad activation to bf16 in the wrapper: halves streamed x bytes.
    # Padded hidden columns are tanh(0 + 0) = 0, so they contribute nothing to
    # the second matmul; padded output rows/cols are sliced off at the end.
    x_p = jnp.zeros((B_pad, F_pad), jnp.bfloat16).at[:B, :F].set(
        emb_in.astype(jnp.bfloat16))

    vmem_needed = _vmem_needed(tb, F_pad, out_itemsize)
    vmem_limit = int(min(max(2 * vmem_needed, 32 * 1024 * 1024), vmem_cap))

    cost = pl.CostEstimate(
        flops=4 * B_pad * F_pad * F_pad,           # two matmuls
        transcendentals=B_pad * F_pad,             # tanh
        bytes_accessed=(B_pad * F_pad * 2                   # bf16 x
                        + B_pad * F_pad * out_itemsize      # output
                        + 2 * F_pad * F_pad * 2             # bf16 weights
                        + 2 * F_pad * 4),                   # biases
    )

    def run(single_buffer_consts):
        in_specs, out_spec = _make_specs(tb, F_pad, single_buffer_consts)
        return pl.pallas_call(
            _fcl_kernel,
            out_shape=jax.ShapeDtypeStruct((B_pad, F_pad), out_dtype),
            grid_spec=pltpu.PrefetchScalarGridSpec(
                num_scalar_prefetch=0,
                grid=(n_tiles,),
                in_specs=in_specs,
                out_specs=out_spec,
            ),
            compiler_params=pltpu.CompilerParams(
                dimension_semantics=("parallel",),
                vmem_limit_bytes=vmem_limit,
            ),
            cost_estimate=cost,
        )(x_p, params.w1, params.b1, params.w2, params.b2)

    try:
        out_padded = run(True)
    except Exception:
        # Fallback for jax builds where pipeline_mode=pl.Buffered(1) on a
        # pallas_call BlockSpec is not supported.
        out_padded = run(False)

    return out_padded[:B, :F]


def init_fcl_params(key, fmaps, dtype=jnp.float32):
    """Deterministic init mimicking PyTorch nn.Linear default (uniform +/- 1/sqrt(fan_in))."""
    k1, k2, k3, k4 = jax.random.split(key, 4)
    bound = 1.0 / (fmaps ** 0.5)
    # PyTorch stores weights as [out, in]; we keep [in, out] (pre-transposed).
    w1 = jax.random.uniform(k1, (fmaps, fmaps), dtype, -bound, bound)
    b1 = jax.random.uniform(k2, (fmaps,), dtype, -bound, bound)
    w2 = jax.random.uniform(k3, (fmaps, fmaps), dtype, -bound, bound)
    b2 = jax.random.uniform(k4, (fmaps,), dtype, -bound, bound)
    return w1, b1, w2, b2


def _fcl_reference(emb_in, w1, b1, w2, b2):
    """Pure-JAX reference mirroring the kernel's bf16-MXU numerics."""
    f32 = jnp.float32
    xb = emb_in.astype(jnp.bfloat16).astype(f32)
    w1b = w1.astype(jnp.bfloat16).astype(f32)
    w2b = w2.astype(jnp.bfloat16).astype(f32)
    h = jnp.tanh(jnp.dot(xb, w1b, precision=lax.Precision.HIGHEST) + b1)
    hb = h.astype(jnp.bfloat16).astype(f32)
    return jnp.dot(hb, w2b, precision=lax.Precision.HIGHEST) + b2


if __name__ == "__main__":
    key = jax.random.PRNGKey(0)
    k_in, k_params, k_in2, k_params2 = jax.random.split(key, 4)

    # Case 1: shapes consistent with the module (fmaps=32).
    batch, fmaps = 8, 32
    emb_in = jax.random.normal(k_in, (batch, fmaps), dtype=jnp.float32)
    w1, b1, w2, b2 = init_fcl_params(k_params, fmaps)
    params = prepare_fcl_params(w1, b1, w2, b2)
    out = jax.block_until_ready(fcl_forward(emb_in, params))
    ref = _fcl_reference(emb_in, w1, b1, w2, b2)
    assert out.shape == (batch, fmaps)
    assert jnp.allclose(out, ref, atol=2e-2, rtol=2e-2), \
        float(jnp.max(jnp.abs(out - ref)))

    # Case 2: ragged batch + non-128 fmaps to exercise padding/tiling paths.
    batch2, fmaps2 = 20, 48
    emb_in2 = jax.random.normal(k_in2, (batch2, fmaps2), dtype=jnp.float32)
    rp2 = init_fcl_params(k_params2, fmaps2)
    params2 = prepare_fcl_params(*rp2)
    out2 = jax.block_until_ready(fcl_forward(emb_in2, params2, block_b=8))
    ref2 = _fcl_reference(emb_in2, *rp2)
    assert out2.shape == (batch2, fmaps2)
    assert jnp.allclose(out2, ref2, atol=2e-2, rtol=2e-2), \
        float(jnp.max(jnp.abs(out2 - ref2)))

    print("KERNEL_OK")
</pallas_src>

<mosaic_0001>
module attributes {stable_mosaic.version = 11 : i64} {
  func.func @_fcl_kernel(%arg0: i32, %arg1: memref<8x128xbf16, #tpu.memory_space<vmem>>, %arg2: memref<128x128xbf16, #tpu.memory_space<vmem>>, %arg3: memref<1x128xf32, #tpu.memory_space<vmem>>, %arg4: memref<128x128xbf16, #tpu.memory_space<vmem>>, %arg5: memref<1x128xf32, #tpu.memory_space<vmem>>, %arg6: memref<8x128xf32, #tpu.memory_space<vmem>>) attributes {dimension_semantics = [#tpu.dimension_semantics<parallel>], iteration_bounds = array<i64: 1>, scalar_prefetch = 0 : i64, scratch_operands = 0 : i64, tpu.core_type = #tpu.core_type<tc>, window_params = [{transform_indices = @transform_0, window_bounds = array<i64: 8, 128>}, {pipeline_mode = #tpu.pipeline_mode<synchronous>, transform_indices = @transform_1, window_bounds = array<i64: 128, 128>}, {pipeline_mode = #tpu.pipeline_mode<synchronous>, transform_indices = @transform_2, window_bounds = array<i64: 1, 128>}, {pipeline_mode = #tpu.pipeline_mode<synchronous>, transform_indices = @transform_3, window_bounds = array<i64: 128, 128>}, {pipeline_mode = #tpu.pipeline_mode<synchronous>, transform_indices = @transform_4, window_bounds = array<i64: 1, 128>}, {transform_indices = @transform_5, window_bounds = array<i64: 8, 128>}]} {
    %c0 = arith.constant 0 : index
    %c0_0 = arith.constant 0 : index
    %0 = vector.load %arg1[%c0, %c0_0] : memref<8x128xbf16, #tpu.memory_space<vmem>>, vector<8x128xbf16>
    %c0_1 = arith.constant 0 : index
    %c0_2 = arith.constant 0 : index
    %1 = vector.load %arg2[%c0_1, %c0_2] : memref<128x128xbf16, #tpu.memory_space<vmem>>, vector<128x128xbf16>
    %cst = arith.constant dense<0.000000e+00> : vector<8x128xf32>
    %2 = tpu.matmul %0, %1, %cst {dimension_numbers = #tpu.dot_dimension_numbers<[1], [0], [0], [1], [0, 0, 1, 1], [], []>} : vector<8x128xbf16>, vector<128x128xbf16>, vector<8x128xf32> -> vector<8x128xf32>
    %c0_3 = arith.constant 0 : index
    %c0_4 = arith.constant 0 : index
    %3 = vector.load %arg3[%c0_3, %c0_4] : memref<1x128xf32, #tpu.memory_space<vmem>>, vector<1x128xf32>
    %4 = vector.broadcast %3 : vector<1x128xf32> to vector<8x128xf32>
    %5 = arith.addf %2, %4 : vector<8x128xf32>
    %6 = math.tanh %5 : vector<8x128xf32>
    %7 = arith.truncf %6 : vector<8x128xf32> to vector<8x128xbf16>
    %c0_5 = arith.constant 0 : index
    %c0_6 = arith.constant 0 : index
    %8 = vector.load %arg4[%c0_5, %c0_6] : memref<128x128xbf16, #tpu.memory_space<vmem>>, vector<128x128xbf16>
    %cst_7 = arith.constant dense<0.000000e+00> : vector<8x128xf32>
    %9 = tpu.matmul %7, %8, %cst_7 {dimension_numbers = #tpu.dot_dimension_numbers<[1], [0], [0], [1], [0, 0, 1, 1], [], []>} : vector<8x128xbf16>, vector<128x128xbf16>, vector<8x128xf32> -> vector<8x128xf32>
    %c0_8 = arith.constant 0 : index
    %c0_9 = arith.constant 0 : index
    %10 = vector.load %arg5[%c0_8, %c0_9] : memref<1x128xf32, #tpu.memory_space<vmem>>, vector<1x128xf32>
    %11 = vector.broadcast %10 : vector<1x128xf32> to vector<8x128xf32>
    %12 = arith.addf %9, %11 : vector<8x128xf32>
    %c0_10 = arith.constant 0 : index
    %c0_11 = arith.constant 0 : index
    %13 = vector.load %arg6[%c0_10, %c0_11] : memref<8x128xf32, #tpu.memory_space<vmem>>, vector<8x128xf32>
    tpu.vector_store %arg6[%c0_10, %c0_11], %12 {strides = array<i32>} : memref<8x128xf32, #tpu.memory_space<vmem>>, vector<8x128xf32>,
    return
  }
  func.func @transform_0(%arg0: i32) -> (i32, i32) {
    %c0_i32 = arith.constant 0 : i32
    %c0_i32_0 = arith.constant 0 : i32
    return %arg0, %c0_i32 : i32, i32
  }
  func.func @transform_1(%arg0: i32) -> (i32, i32) {
    %c0_i32 = arith.constant 0 : i32
    %c0_i32_0 = arith.constant 0 : i32
    %c0_i32_1 = arith.constant 0 : i32
    return %c0_i32, %c0_i32_0 : i32, i32
  }
  func.func @transform_2(%arg0: i32) -> (i32, i32) {
    %c0_i32 = arith.constant 0 : i32
    %c0_i32_0 = arith.constant 0 : i32
    %c0_i32_1 = arith.constant 0 : i32
    return %c0_i32, %c0_i32_0 : i32, i32
  }
  func.func @transform_3(%arg0: i32) -> (i32, i32) {
    %c0_i32 = arith.constant 0 : i32
    %c0_i32_0 = arith.constant 0 : i32
    %c0_i32_1 = arith.constant 0 : i32
    return %c0_i32, %c0_i32_0 : i32, i32
  }
  func.func @transform_4(%arg0: i32) -> (i32, i32) {
    %c0_i32 = arith.constant 0 : i32
    %c0_i32_0 = arith.constant 0 : i32
    %c0_i32_1 = arith.constant 0 : i32
    return %c0_i32, %c0_i32_0 : i32, i32
  }
  func.func @transform_5(%arg0: i32) -> (i32, i32) {
    %c0_i32 = arith.constant 0 : i32
    %c0_i32_0 = arith.constant 0 : i32
    return %arg0, %c0_i32 : i32, i32
  }
}

module attributes {stable_mosaic.version = 11 : i64} {
  func.func @_fcl_kernel(%arg0: i32, %arg1: memref<8x128xbf16, #tpu.memory_space<vmem>>, %arg2: memref<128x128xbf16, #tpu.memory_space<vmem>>, %arg3: memref<1x128xf32, #tpu.memory_space<vmem>>, %arg4: memref<128x128xbf16, #tpu.memory_space<vmem>>, %arg5: memref<1x128xf32, #tpu.memory_space<vmem>>, %arg6: memref<8x128xf32, #tpu.memory_space<vmem>>) attributes {dimension_semantics = [#tpu.dimension_semantics<parallel>], iteration_bounds = array<i64: 1>, scalar_prefetch = 0 : i64, scratch_operands = 0 : i64, tpu.core_type = #tpu.core_type<tc>, window_params = [{transform_indices = @transform_0, window_bounds = array<i64: 8, 128>}, {pipeline_mode = #tpu.pipeline_mode<synchronous>, transform_indices = @transform_1, window_bounds = array<i64: 128, 128>}, {pipeline_mode = #tpu.pipeline_mode<synchronous>, transform_indices = @transform_2, window_bounds = array<i64: 1, 128>}, {pipeline_mode = #tpu.pipeline_mode<synchronous>, transform_indices = @transform_3, window_bounds = array<i64: 128, 128>}, {pipeline_mode = #tpu.pipeline_mode<synchronous>, transform_indices = @transform_4, window_bounds = array<i64: 1, 128>}, {transform_indices = @transform_5, window_bounds = array<i64: 8, 128>}]} {
    %c0 = arith.constant 0 : index
    %c0_0 = arith.constant 0 : index
    %0 = vector.load %arg1[%c0, %c0_0] : memref<8x128xbf16, #tpu.memory_space<vmem>>, vector<8x128xbf16>
    %c0_1 = arith.constant 0 : index
    %c0_2 = arith.constant 0 : index
    %1 = vector.load %arg2[%c0_1, %c0_2] : memref<128x128xbf16, #tpu.memory_space<vmem>>, vector<128x128xbf16>
    %cst = arith.constant dense<0.000000e+00> : vector<8x128xf32>
    %2 = tpu.matmul %0, %1, %cst {dimension_numbers = #tpu.dot_dimension_numbers<[1], [0], [0], [1], [0, 0, 1, 1], [], []>} : vector<8x128xbf16>, vector<128x128xbf16>, vector<8x128xf32> -> vector<8x128xf32>
    %c0_3 = arith.constant 0 : index
    %c0_4 = arith.constant 0 : index
    %3 = vector.load %arg3[%c0_3, %c0_4] : memref<1x128xf32, #tpu.memory_space<vmem>>, vector<1x128xf32>
    %4 = vector.broadcast %3 : vector<1x128xf32> to vector<8x128xf32>
    %5 = arith.addf %2, %4 : vector<8x128xf32>
    %6 = math.tanh %5 : vector<8x128xf32>
    %7 = arith.truncf %6 : vector<8x128xf32> to vector<8x128xbf16>
    %c0_5 = arith.constant 0 : index
    %c0_6 = arith.constant 0 : index
    %8 = vector.load %arg4[%c0_5, %c0_6] : memref<128x128xbf16, #tpu.memory_space<vmem>>, vector<128x128xbf16>
    %cst_7 = arith.constant dense<0.000000e+00> : vector<8x128xf32>
    %9 = tpu.matmul %7, %8, %cst_7 {dimension_numbers = #tpu.dot_dimension_numbers<[1], [0], [0], [1], [0, 0, 1, 1], [], []>} : vector<8x128xbf16>, vector<128x128xbf16>, vector<8x128xf32> -> vector<8x128xf32>
    %c0_8 = arith.constant 0 : index
    %c0_9 = arith.constant 0 : index
    %10 = vector.load %arg5[%c0_8, %c0_9] : memref<1x128xf32, #tpu.memory_space<vmem>>, vector<1x128xf32>
    %11 = vector.broadcast %10 : vector<1x128xf32> to vector<8x128xf32>
    %12 = arith.addf %9, %11 : vector<8x128xf32>
    %c0_10 = arith.constant 0 : index
    %c0_11 = arith.constant 0 : index
    %13 = vector.load %arg6[%c0_10, %c0_11] : memref<8x128xf32, #tpu.memory_space<vmem>>, vector<8x128xf32>
    tpu.vector_store %arg6[%c0_10, %c0_11], %12 {strides = array<i32>} : memref<8x128xf32, #tpu.memory_space<vmem>>, vector<8x128xf32>,
    return
  }
  func.func @transform_0(%arg0: i32) -> (i32, i32) {
    %c0_i32 = arith.constant 0 : i32
    %c0_i32_0 = arith.constant 0 : i32
    return %arg0, %c0_i32 : i32, i32
  }
  func.func @transform_1(%arg0: i32) -> (i32, i32) {
    %c0_i32 = arith.constant 0 : i32
    %c0_i32_0 = arith.constant 0 : i32
    %c0_i32_1 = arith.constant 0 : i32
    return %c0_i32, %c0_i32_0 : i32, i32
  }
  func.func @transform_2(%arg0: i32) -> (i32, i32) {
    %c0_i32 = arith.constant 0 : i32
    %c0_i32_0 = arith.constant 0 : i32
    %c0_i32_1 = arith.constant 0 : i32
    return %c0_i32, %c0_i32_0 : i32, i32
  }
  func.func @transform_3(%arg0: i32) -> (i32, i32) {
    %c0_i32 = arith.constant 0 : i32
    %c0_i32_0 = arith.constant 0 : i32
    %c0_i32_1 = arith.constant 0 : i32
    return %c0_i32, %c0_i32_0 : i32, i32
  }
  func.func @transform_4(%arg0: i32) -> (i32, i32) {
    %c0_i32 = arith.constant 0 : i32
    %c0_i32_0 = arith.constant 0 : i32
    %c0_i32_1 = arith.constant 0 : i32
    return %c0_i32, %c0_i32_0 : i32, i32
  }
  func.func @transform_5(%arg0: i32) -> (i32, i32) {
    %c0_i32 = arith.constant 0 : i32
    %c0_i32_0 = arith.constant 0 : i32
    return %arg0, %c0_i32 : i32, i32
  }
}

</mosaic_0001>

<bundles_post_ra>
// kernel: tpu_custom_call.1
= control target key start
LH: loop header
LB: loop body
LE: loop exit
PB: predicated region body
PF: predicated region fallthrough
CT: control target
= control target key end

     0   :  { %10 = vsyncpa [#allocation3], 0  ;;  %s547_s0 = inlined_call_operand.hbm [shape: bf16[8,128], index: 0, kind: input, shape index: {}]   ;;  %s548_s1 = inlined_call_operand.hbm [shape: bf16[128,128], index: 1, kind: input, shape index: {}]   ;;  %s549_s2 = inlined_call_operand.vmem [shape: f32[1,128], index: 2, kind: input, shape index: {}]   ;;  %s550_s3 = inlined_call_operand.hbm [shape: bf16[128,128], index: 3, kind: input, shape index: {}]   ;;  %s551_s4 = inlined_call_operand.vmem [shape: f32[1,128], index: 4, kind: input, shape index: {}]   ;;  %s552_s5 = inlined_call_operand.hbm [shape: f32[8,128], index: 5, kind: output, shape index: {}]  }
   0x1   :  { %11 = vsyncpa [#allocation6], 0 }
   0x2   :  { %12 = vsyncpa [#allocation4], 0  ;;  %s491_s18 = smov [#allocation5]  }
   0x3   :  { %s28_s19 = sshll.u32 %s491_s18, 4  ;;  %s29_s19 = int_to_ptr.vmem [resolvable:$true] %s28_s19 }
   0x4   :  { %s413_s20 = scalar_lea.vmem %s29_s19, 1024  ;;  %p418_p1 = scmp.lt.s32.totalorder %s29_s19, %s29_s19 }
   0x5   :  { %p414_p0 = scmp.ne.s32.totalorder %s29_s19, %s413_s20  ;;  %p419_p2 = scmp.lt.s32.totalorder %s413_s20, %s413_s20 }
   0x7   :  { %p420_p3 = por %p419_p2, %p418_p1 }
   0x9   :  { %p421_p4 = pnand %p420_p3, %p414_p0 }
   0xb   :  { %424 = shalt.err (!%p421_p4)
}
   0xc   :  { %s492_s21 = smov 64   ;;  %s493_s22 = smov 4  }
   0xd   :  { %34 = dma.hbm_to_vmem [thread:$0]  %s548_s1, 1024, %s29_s19, [#allocation6], %s492_s21, %s492_s21, %s493_s22  }
   0xe   :  { %s494_s25 = smov [#allocation2]   ;;  %s495_s27 = smov [#allocation7]  }
   0xf   :  { %s19_s26 = sshll.u32 %s494_s25, 4  ;;  %s42_s28 = sshll.u32 %s495_s27, 4  ;;  %s20_s26 = int_to_ptr.vmem [resolvable:$true] %s19_s26  ;;  %s43_s28 = int_to_ptr.vmem [resolvable:$true] %s42_s28 }
  0x10   :  { %s433_s29 = scalar_lea.vmem %s20_s26, 64  ;;  %p438_p6 = scmp.lt.s32.totalorder %s20_s26, %s20_s26 }
  0x11   :  { %p434_p5 = scmp.ne.s32.totalorder %s20_s26, %s433_s29  ;;  %p439_p7 = scmp.lt.s32.totalorder %s433_s29, %s433_s29 }
  0x13   :  { %p440_p8 = por %p439_p7, %p438_p6 }
  0x15   :  { %p441_p9 = pnand %p440_p8, %p434_p5 }
  0x17   :  { %444 = shalt.err (!%p441_p9)
}
  0x18   :  { %22 = dma.hbm_to_vmem [thread:$0]  %s547_s0, 64, %s20_s26, [#allocation3]  }
  0x19   :  { %s453_s7 = scalar_lea.vmem %s43_s28, 1024  ;;  %p458_p11 = scmp.lt.s32.totalorder %s43_s28, %s43_s28 }
  0x1a   :  { %p454_p10 = scmp.ne.s32.totalorder %s43_s28, %s453_s7  ;;  %p459_p12 = scmp.lt.s32.totalorder %s453_s7, %s453_s7 }
  0x1c   :  { %p460_p13 = por %p459_p12, %p458_p11 }
  0x1e   :  { %p461_p0 = pnand %p460_p13, %p454_p10 }
  0x20   :  { %464 = shalt.err (!%p461_p0)
}
  0x21   :  { %48 = dma.hbm_to_vmem [thread:$0]  %s550_s3, 1024, %s43_s28, [#allocation6], %s492_s21, %s492_s21, %s493_s22  }
  0x22   :  { %485 = dma.done.wait [#allocation3], 64  }
  0x23   :  { %486 = vsyncadd [#allocation3], 4294967232 }
  0x24   :  { %487 = dma.done.wait [#allocation6], 2048  }
  0x25   :  { %488 = vsyncadd [#allocation6], 4294965248  ;;  %v496_v0 = vmov 0.0   ;;  %vm497_vm0 = vmmov 0   ;;  %v387_v1 = vld [vmem:[#allocation5 + $0x38] sm:$0xff]   ;;  %v388_v2 = vld [vmem:[#allocation5 + $0x30] sm:$0xff]  }
  0x26   :  { %339 = vmatprep.subr.bf16.mxu0 %v496_v0  ;;  %355 = vmatprep.mubr.msk.bf16.mxu0 %vm497_vm0, %v496_v0  ;;  %v389_v3 = vld [vmem:[#allocation5 + $0x28] sm:$0xff]   ;;  %v395_v4 = vld [vmem:[#allocation7 + $0x38] sm:$0xff]   ;;  %v390_v5 = vld [vmem:[#allocation5 + $0x20] sm:$0xff]   ;;  %s498_s11 = smov [#allocation8]  }
  0x27   :  { %359 = vmatprep.subr.bf16.mxu1 %v496_v0  ;;  %375 = vmatprep.mubr.msk.bf16.mxu1 %vm497_vm0, %v496_v0  ;;  %v396_v6 = vld [vmem:[#allocation7 + $0x30] sm:$0xff]   ;;  %v391_v7 = vld [vmem:[#allocation5 + $0x18] sm:$0xff]   ;;  %v397_v8 = vld [vmem:[#allocation7 + $0x28] sm:$0xff]   ;;  %s293_s12 = sshll.u32 %s498_s11, 4  ;;  %s294_s12 = int_to_ptr.vmem [resolvable:$true] %s293_s12 }
  0x28   :  { %340 = vmatpush3.bf16.msra.mxu0 %v387_v1  ;;  %360 = vmatpush3.bf16.msra.mxu1 %v395_v4  ;;  %v392_v9 = vld [vmem:[#allocation5 + $0x10] sm:$0xff]   ;;  %v393_v10 = vld [vmem:[#allocation5 + $0x8] sm:$0xff]   ;;  %v394_v11 = vld [vmem:[#allocation5] sm:$0xff]   ;;  %p470_p2 = scmp.lt.s32.totalorder %s294_s12, %s294_s12 }
  0x29   :  { %341 = vmatprep.subr.bf16.mxu0 %v496_v0  ;;  %361 = vmatprep.subr.bf16.mxu1 %v496_v0  ;;  %v61_v12 = vld [vmem:[#allocation2] sm:$0xf]  ;;  %v398_v13 = vld [vmem:[#allocation7 + $0x20] sm:$0xff]   ;;  %v400_v15 = vld [vmem:[#allocation7 + $0x10] sm:$0xff]  }
  0x2a   :  { %v399_v14 = vld [vmem:[#allocation7 + $0x18] sm:$0xff]   ;;  %v401_v16 = vld [vmem:[#allocation7 + $0x8] sm:$0xff]   ;;  %v402_v17 = vld [vmem:[#allocation7] sm:$0xff]  }
  0x2b   :  { %v303_v18 = vld [vmem:[%s549_s2] ss:$0 sm:$0xff]  ;;  %s465_s2 = scalar_lea.vmem %s294_s12, 128 }
  0x2c   :  { %342 = vmatpush3.bf16.msra.mxu0 %v388_v2  ;;  %362 = vmatpush3.bf16.msra.mxu1 %v396_v6  ;;  %v312_v26 = vld [vmem:[%s551_s4] ss:$0 sm:$0xff]  ;;  %p466_p1 = scmp.ne.s32.totalorder %s294_s12, %s465_s2  ;;  %p471_p3 = scmp.lt.s32.totalorder %s465_s2, %s465_s2 }
  0x2d   :  { %343 = vmatprep.subr.bf16.mxu0 %v496_v0  ;;  %363 = vmatprep.subr.bf16.mxu1 %v496_v0 }
  0x2e   :  { %p472_p4 = por %p471_p3, %p470_p2 }
  0x30   :  { %344 = vmatpush3.bf16.msra.mxu0 %v389_v3  ;;  %364 = vmatpush3.bf16.msra.mxu1 %v397_v8  ;;  %p473_p5 = pnand %p472_p4, %p466_p1 }
  0x31   :  { %345 = vmatprep.subr.bf16.mxu0 %v496_v0  ;;  %365 = vmatprep.subr.bf16.mxu1 %v496_v0 }
  0x34   :  { %346 = vmatpush3.bf16.msra.mxu0 %v390_v5  ;;  %366 = vmatpush3.bf16.msra.mxu1 %v398_v13 }
  0x35   :  { %347 = vmatprep.subr.bf16.mxu0 %v496_v0  ;;  %367 = vmatprep.subr.bf16.mxu1 %v496_v0 }
  0x38   :  { %348 = vmatpush3.bf16.msra.mxu0 %v391_v7  ;;  %368 = vmatpush3.bf16.msra.mxu1 %v399_v14 }
  0x39   :  { %349 = vmatprep.subr.bf16.mxu0 %v496_v0  ;;  %369 = vmatprep.subr.bf16.mxu1 %v496_v0 }
  0x3c   :  { %350 = vmatpush3.bf16.msra.mxu0 %v392_v9  ;;  %370 = vmatpush3.bf16.msra.mxu1 %v400_v15 }
  0x3d   :  { %351 = vmatprep.subr.bf16.mxu0 %v496_v0  ;;  %371 = vmatprep.subr.bf16.mxu1 %v496_v0 }
  0x40   :  { %352 = vmatpush3.bf16.msra.mxu0 %v393_v10  ;;  %372 = vmatpush3.bf16.msra.mxu1 %v401_v16 }
  0x41   :  { %353 = vmatprep.subr.bf16.mxu0 %v496_v0  ;;  %373 = vmatprep.subr.bf16.mxu1 %v496_v0 }
  0x44   :  { %354 = vmatpush3.bf16.msra.mxu0 %v394_v11  ;;  %374 = vmatpush3.bf16.msra.mxu1 %v402_v17 }
  0x47   :  { %356 = vmatmul.mubr.bf16.vlgmr.msra.gmra.mxu0 %v61_v12 }
 0x107   :  { %v167_v19 = vpop.f32.mrf.mxu0 }
 0x108   :  { %v168_v20 = vadd.f32 %v303_v18, %v167_v19 }
 0x109   :  { %v357_v21 = vpop.f32.mrf.mxu0 }
 0x10a   :  { %403 = vtanh.f32 %v168_v20 }
 0x10b   :  { %v170_v22 = vpop.f32.mrf.mxu0 }
 0x10d   :  { %v358_v23 = vpop.f32.mrf.mxu0 }
 0x117   :  { %v404_v24 = vpop.eup %403 }
 0x118   :  { %v174_v25 = vpack.c.bf16 %v404_v24, %v404_v24 }
 0x11a   :  { %376 = vmatmul.mubr.bf16.vlgmr.msra.gmra.mxu1 %v174_v25 }
 0x1da   :  { %v280_v27 = vpop.f32.mrf.mxu1 }
 0x1db   :  { %v281_v28 = vadd.f32 %v312_v26, %v280_v27 }
 0x1dc   :  { %v377_v29 = vpop.f32.mrf.mxu1 }
 0x1dd   :  { %286 = vst [vmem:[#allocation8] sm:$0xff] %v281_v28 }
 0x1de   :  { %v283_v30 = vpop.f32.mrf.mxu1 }
 0x1df   :  { %476 = shalt.err (!%p473_p5)
}
 0x1e0   :  { %296 = dma.vmem_to_hbm [thread:$0]  %s294_s12, 128, %s552_s5, [#allocation4]   ;;  %v378_v31 = vpop.f32.mrf.mxu1 }
 0x1e1   :  { %489 = dma.done.wait [#allocation4], 128  }
 0x1e2   :  { %490 = vsyncadd [#allocation4], 4294967168 }
 0x1e3   :  { %300 = vsyncpa [#allocation3], 1 }
 0x1e4   :  { %301 = vsyncpa [#allocation6], 1 }
 0x1e5   :  { %302 = vsyncpa [#allocation4], 1 }

// kernel: tpu_custom_call.1
= control target key start
LH: loop header
LB: loop body
LE: loop exit
PB: predicated region body
PF: predicated region fallthrough
CT: control target
= control target key end

     0   :  { %10 = vsyncpa [#allocation3], 0  ;;  %s547_s0 = inlined_call_operand.hbm [shape: bf16[8,128], index: 0, kind: input, shape index: {}]   ;;  %s548_s1 = inlined_call_operand.hbm [shape: bf16[128,128], index: 1, kind: input, shape index: {}]   ;;  %s549_s2 = inlined_call_operand.vmem [shape: f32[1,128], index: 2, kind: input, shape index: {}]   ;;  %s550_s3 = inlined_call_operand.hbm [shape: bf16[128,128], index: 3, kind: input, shape index: {}]   ;;  %s551_s4 = inlined_call_operand.vmem [shape: f32[1,128], index: 4, kind: input, shape index: {}]   ;;  %s552_s5 = inlined_call_operand.hbm [shape: f32[8,128], index: 5, kind: output, shape index: {}]  }
   0x1   :  { %11 = vsyncpa [#allocation6], 0 }
   0x2   :  { %12 = vsyncpa [#allocation4], 0  ;;  %s491_s18 = smov [#allocation5]  }
   0x3   :  { %s28_s19 = sshll.u32 %s491_s18, 4  ;;  %s29_s19 = int_to_ptr.vmem [resolvable:$true] %s28_s19 }
   0x4   :  { %s413_s20 = scalar_lea.vmem %s29_s19, 1024  ;;  %p418_p1 = scmp.lt.s32.totalorder %s29_s19, %s29_s19 }
   0x5   :  { %p414_p0 = scmp.ne.s32.totalorder %s29_s19, %s413_s20  ;;  %p419_p2 = scmp.lt.s32.totalorder %s413_s20, %s413_s20 }
   0x7   :  { %p420_p3 = por %p419_p2, %p418_p1 }
   0x9   :  { %p421_p4 = pnand %p420_p3, %p414_p0 }
   0xb   :  { %424 = shalt.err (!%p421_p4)
}
   0xc   :  { %s492_s21 = smov 64   ;;  %s493_s22 = smov 4  }
   0xd   :  { %34 = dma.hbm_to_vmem [thread:$0]  %s548_s1, 1024, %s29_s19, [#allocation6], %s492_s21, %s492_s21, %s493_s22  }
   0xe   :  { %s494_s25 = smov [#allocation2]   ;;  %s495_s27 = smov [#allocation7]  }
   0xf   :  { %s19_s26 = sshll.u32 %s494_s25, 4  ;;  %s42_s28 = sshll.u32 %s495_s27, 4  ;;  %s20_s26 = int_to_ptr.vmem [resolvable:$true] %s19_s26  ;;  %s43_s28 = int_to_ptr.vmem [resolvable:$true] %s42_s28 }
  0x10   :  { %s433_s29 = scalar_lea.vmem %s20_s26, 64  ;;  %p438_p6 = scmp.lt.s32.totalorder %s20_s26, %s20_s26 }
  0x11   :  { %p434_p5 = scmp.ne.s32.totalorder %s20_s26, %s433_s29  ;;  %p439_p7 = scmp.lt.s32.totalorder %s433_s29, %s433_s29 }
  0x13   :  { %p440_p8 = por %p439_p7, %p438_p6 }
  0x15   :  { %p441_p9 = pnand %p440_p8, %p434_p5 }
  0x17   :  { %444 = shalt.err (!%p441_p9)
}
  0x18   :  { %22 = dma.hbm_to_vmem [thread:$0]  %s547_s0, 64, %s20_s26, [#allocation3]  }
  0x19   :  { %s453_s7 = scalar_lea.vmem %s43_s28, 1024  ;;  %p458_p11 = scmp.lt.s32.totalorder %s43_s28, %s43_s28 }
  0x1a   :  { %p454_p10 = scmp.ne.s32.totalorder %s43_s28, %s453_s7  ;;  %p459_p12 = scmp.lt.s32.totalorder %s453_s7, %s453_s7 }
  0x1c   :  { %p460_p13 = por %p459_p12, %p458_p11 }
  0x1e   :  { %p461_p0 = pnand %p460_p13, %p454_p10 }
  0x20   :  { %464 = shalt.err (!%p461_p0)
}
  0x21   :  { %48 = dma.hbm_to_vmem [thread:$0]  %s550_s3, 1024, %s43_s28, [#allocation6], %s492_s21, %s492_s21, %s493_s22  }
  0x22   :  { %485 = dma.done.wait [#allocation3], 64  }
  0x23   :  { %486 = vsyncadd [#allocation3], 4294967232 }
  0x24   :  { %487 = dma.done.wait [#allocation6], 2048  }
  0x25   :  { %488 = vsyncadd [#allocation6], 4294965248  ;;  %v496_v0 = vmov 0.0   ;;  %vm497_vm0 = vmmov 0   ;;  %v387_v1 = vld [vmem:[#allocation5 + $0x38] sm:$0xff]   ;;  %v388_v2 = vld [vmem:[#allocation5 + $0x30] sm:$0xff]  }
  0x26   :  { %339 = vmatprep.subr.bf16.mxu0 %v496_v0  ;;  %355 = vmatprep.mubr.msk.bf16.mxu0 %vm497_vm0, %v496_v0  ;;  %v389_v3 = vld [vmem:[#allocation5 + $0x28] sm:$0xff]   ;;  %v395_v4 = vld [vmem:[#allocation7 + $0x38] sm:$0xff]   ;;  %v390_v5 = vld [vmem:[#allocation5 + $0x20] sm:$0xff]   ;;  %s498_s11 = smov [#allocation8]  }
  0x27   :  { %359 = vmatprep.subr.bf16.mxu1 %v496_v0  ;;  %375 = vmatprep.mubr.msk.bf16.mxu1 %vm497_vm0, %v496_v0  ;;  %v396_v6 = vld [vmem:[#allocation7 + $0x30] sm:$0xff]   ;;  %v391_v7 = vld [vmem:[#allocation5 + $0x18] sm:$0xff]   ;;  %v397_v8 = vld [vmem:[#allocation7 + $0x28] sm:$0xff]   ;;  %s293_s12 = sshll.u32 %s498_s11, 4  ;;  %s294_s12 = int_to_ptr.vmem [resolvable:$true] %s293_s12 }
  0x28   :  { %340 = vmatpush3.bf16.msra.mxu0 %v387_v1  ;;  %360 = vmatpush3.bf16.msra.mxu1 %v395_v4  ;;  %v392_v9 = vld [vmem:[#allocation5 + $0x10] sm:$0xff]   ;;  %v393_v10 = vld [vmem:[#allocation5 + $0x8] sm:$0xff]   ;;  %v394_v11 = vld [vmem:[#allocation5] sm:$0xff]   ;;  %p470_p2 = scmp.lt.s32.totalorder %s294_s12, %s294_s12 }
  0x29   :  { %341 = vmatprep.subr.bf16.mxu0 %v496_v0  ;;  %361 = vmatprep.subr.bf16.mxu1 %v496_v0  ;;  %v61_v12 = vld [vmem:[#allocation2] sm:$0xf]  ;;  %v398_v13 = vld [vmem:[#allocation7 + $0x20] sm:$0xff]   ;;  %v400_v15 = vld [vmem:[#allocation7 + $0x10] sm:$0xff]  }
  0x2a   :  { %v399_v14 = vld [vmem:[#allocation7 + $0x18] sm:$0xff]   ;;  %v401_v16 = vld [vmem:[#allocation7 + $0x8] sm:$0xff]   ;;  %v402_v17 = vld [vmem:[#allocation7] sm:$0xff]  }
  0x2b   :  { %v303_v18 = vld [vmem:[%s549_s2] ss:$0 sm:$0xff]  ;;  %s465_s2 = scalar_lea.vmem %s294_s12, 128 }
  0x2c   :  { %342 = vmatpush3.bf16.msra.mxu0 %v388_v2  ;;  %362 = vmatpush3.bf16.msra.mxu1 %v396_v6  ;;  %v312_v26 = vld [vmem:[%s551_s4] ss:$0 sm:$0xff]  ;;  %p466_p1 = scmp.ne.s32.totalorder %s294_s12, %s465_s2  ;;  %p471_p3 = scmp.lt.s32.totalorder %s465_s2, %s465_s2 }
  0x2d   :  { %343 = vmatprep.subr.bf16.mxu0 %v496_v0  ;;  %363 = vmatprep.subr.bf16.mxu1 %v496_v0 }
  0x2e   :  { %p472_p4 = por %p471_p3, %p470_p2 }
  0x30   :  { %344 = vmatpush3.bf16.msra.mxu0 %v389_v3  ;;  %364 = vmatpush3.bf16.msra.mxu1 %v397_v8  ;;  %p473_p5 = pnand %p472_p4, %p466_p1 }
  0x31   :  { %345 = vmatprep.subr.bf16.mxu0 %v496_v0  ;;  %365 = vmatprep.subr.bf16.mxu1 %v496_v0 }
  0x34   :  { %346 = vmatpush3.bf16.msra.mxu0 %v390_v5  ;;  %366 = vmatpush3.bf16.msra.mxu1 %v398_v13 }
  0x35   :  { %347 = vmatprep.subr.bf16.mxu0 %v496_v0  ;;  %367 = vmatprep.subr.bf16.mxu1 %v496_v0 }
  0x38   :  { %348 = vmatpush3.bf16.msra.mxu0 %v391_v7  ;;  %368 = vmatpush3.bf16.msra.mxu1 %v399_v14 }
  0x39   :  { %349 = vmatprep.subr.bf16.mxu0 %v496_v0  ;;  %369 = vmatprep.subr.bf16.mxu1 %v496_v0 }
  0x3c   :  { %350 = vmatpush3.bf16.msra.mxu0 %v392_v9  ;;  %370 = vmatpush3.bf16.msra.mxu1 %v400_v15 }
  0x3d   :  { %351 = vmatprep.subr.bf16.mxu0 %v496_v0  ;;  %371 = vmatprep.subr.bf16.mxu1 %v496_v0 }
  0x40   :  { %352 = vmatpush3.bf16.msra.mxu0 %v393_v10  ;;  %372 = vmatpush3.bf16.msra.mxu1 %v401_v16 }
  0x41   :  { %353 = vmatprep.subr.bf16.mxu0 %v496_v0  ;;  %373 = vmatprep.subr.bf16.mxu1 %v496_v0 }
  0x44   :  { %354 = vmatpush3.bf16.msra.mxu0 %v394_v11  ;;  %374 = vmatpush3.bf16.msra.mxu1 %v402_v17 }
  0x47   :  { %356 = vmatmul.mubr.bf16.vlgmr.msra.gmra.mxu0 %v61_v12 }
 0x107   :  { %v167_v19 = vpop.f32.mrf.mxu0 }
 0x108   :  { %v168_v20 = vadd.f32 %v303_v18, %v167_v19 }
 0x109   :  { %v357_v21 = vpop.f32.mrf.mxu0 }
 0x10a   :  { %403 = vtanh.f32 %v168_v20 }
 0x10b   :  { %v170_v22 = vpop.f32.mrf.mxu0 }
 0x10d   :  { %v358_v23 = vpop.f32.mrf.mxu0 }
 0x117   :  { %v404_v24 = vpop.eup %403 }
 0x118   :  { %v174_v25 = vpack.c.bf16 %v404_v24, %v404_v24 }
 0x11a   :  { %376 = vmatmul.mubr.bf16.vlgmr.msra.gmra.mxu1 %v174_v25 }
 0x1da   :  { %v280_v27 = vpop.f32.mrf.mxu1 }
 0x1db   :  { %v281_v28 = vadd.f32 %v312_v26, %v280_v27 }
 0x1dc   :  { %v377_v29 = vpop.f32.mrf.mxu1 }
 0x1dd   :  { %286 = vst [vmem:[#allocation8] sm:$0xff] %v281_v28 }
 0x1de   :  { %v283_v30 = vpop.f32.mrf.mxu1 }
 0x1df   :  { %476 = shalt.err (!%p473_p5)
}
 0x1e0   :  { %296 = dma.vmem_to_hbm [thread:$0]  %s294_s12, 128, %s552_s5, [#allocation4]   ;;  %v378_v31 = vpop.f32.mrf.mxu1 }
 0x1e1   :  { %489 = dma.done.wait [#allocation4], 128  }
 0x1e2   :  { %490 = vsyncadd [#allocation4], 4294967168 }
 0x1e3   :  { %300 = vsyncpa [#allocation3], 1 }
 0x1e4   :  { %301 = vsyncpa [#allocation6], 1 }
 0x1e5   :  { %302 = vsyncpa [#allocation4], 1 }

</bundles_post_ra>
